<compile_context>
chip_gen: v7x
topology: tpu7x:2x2x1
jax: 0.10.0
libtpu: 0.0.40
codegen_flags: <defaults>
</compile_context>

<pallas_src>
import jax
import jax.numpy as jnp
from jax.experimental import pallas as pl
from jax.experimental.pallas import tpu as pltpu


# Per-block byte budget.  Input and output blocks are each double-buffered by
# the BlockSpec pipeline, so steady-state VMEM footprint is ~4x this value.
_BLOCK_BYTES = 2 * 1024 * 1024


# ---------------------------------------------------------------------------
# Kernels
# ---------------------------------------------------------------------------
def _copy_kernel(x_ref, o_ref):
    # Straight copy: the chomp lives in the grid / BlockSpecs.
    o_ref[...] = x_ref[...]


def _slab_chomp_kernel(x_ref, o_ref):
    # Short-time fallback (t_out < 128): full time axis per block, slice the
    # chomped tail off in VMEM.  Perf is irrelevant at these sizes.
    o_ref[...] = x_ref[:, : o_ref.shape[-1]]


# ---------------------------------------------------------------------------
# Wrapper
# ---------------------------------------------------------------------------
def _round_down(v: int, m: int) -> int:
    return (v // m) * m


def chomp1d(x: jax.Array, chomp_size: int) -> jax.Array:
    """Pallas equivalent of Chomp1d.forward: x[:, :, :-chomp_size]."""
    assert chomp_size > 0, "chomp_size must be positive"
    n, c, t = x.shape
    t_out = t - chomp_size
    assert t_out > 0, "chomp_size must be smaller than the time dimension"

    # Fold batch and channels into a single row axis (free for a contiguous
    # (N, C, T) array).
    rows = n * c
    x2 = x.reshape(rows, t)

    itemsize = jnp.dtype(x.dtype).itemsize
    budget_elems = max(1, _BLOCK_BYTES // itemsize)

    if t_out >= 128:
        # Lane-dense time tile: multiple of 128, capped at 2048 lanes.
        t_tile = min(2048, _round_down(t_out, 128))

        # Row tile from the byte budget; multiple of 32 keeps packed dtypes
        # (bf16 / int8) sublane-aligned, fall back to 8, then full-dim.
        r_budget = max(1, budget_elems // t_tile)
        if rows <= r_budget:
            r_tile = rows  # block dim == full array dim: always legal
        else:
            r_tile = _round_down(min(r_budget, rows), 32)
            if r_tile == 0:
                r_tile = _round_down(min(r_budget, rows), 8)
            if r_tile == 0:
                r_tile = min(rows, 8)

        # Keep >= ~8 independent grid steps (v7x has 2 TCs sharing the
        # "parallel" grid) — split along rows, never by shrinking t_tile.
        def _steps(rt):
            return pl.cdiv(rows, rt) * pl.cdiv(t_out, t_tile)

        while _steps(r_tile) < 8 and r_tile > 8 and r_tile % 16 == 0:
            r_tile //= 2

        grid = (pl.cdiv(rows, r_tile), pl.cdiv(t_out, t_tile))

        out2 = pl.pallas_call(
            _copy_kernel,
            out_shape=jax.ShapeDtypeStruct((rows, t_out), x.dtype),
            grid=grid,
            in_specs=[pl.BlockSpec((r_tile, t_tile), lambda i, j: (i, j))],
            out_specs=pl.BlockSpec((r_tile, t_tile), lambda i, j: (i, j)),
            compiler_params=pltpu.CompilerParams(
                dimension_semantics=("parallel", "parallel")
            ),
        )(x2)
        return out2.reshape(n, c, t_out)

    # --- tiny-time fallback (t_out < 128) ----------------------------------
    # No 128-lane time tile fits: use the full time axis per block (block dim
    # equal to the array dim is always legal) and slice the tail in VMEM.
    r_budget = max(1, budget_elems // t)
    if rows <= r_budget:
        r_tile = rows
    else:
        r_tile = max(8, _round_down(min(r_budget, rows), 8))

    out2 = pl.pallas_call(
        _slab_chomp_kernel,
        out_shape=jax.ShapeDtypeStruct((rows, t_out), x.dtype),
        grid=(pl.cdiv(rows, r_tile),),
        in_specs=[pl.BlockSpec((r_tile, t), lambda i: (i, 0))],
        out_specs=pl.BlockSpec((r_tile, t_out), lambda i: (i, 0)),
        compiler_params=pltpu.CompilerParams(
            dimension_semantics=("parallel",)
        ),
    )(x2)
    return out2.reshape(n, c, t_out)


if __name__ == "__main__":
    key = jax.random.PRNGKey(0)
    k1, k2, k3 = jax.random.split(key, 3)

    # Tiny shapes matching a toy TCN layer (exercises the short-time fallback).
    n, c, t, chomp = 2, 4, 16, 3
    x_small = jax.random.normal(k1, (n, c, t), dtype=jnp.float32)
    y_small = jax.block_until_ready(chomp1d(x_small, chomp))
    ref_small = x_small[:, :, :-chomp]
    assert y_small.shape == (n, c, t - chomp)
    assert y_small.dtype == x_small.dtype
    assert jnp.array_equal(y_small, ref_small)

    # Small shape that exercises the lane-dense tiled path:
    # T_out = 157 -> two 128-lane time tiles (second one ragged/masked).
    n2, c2, t2, chomp2 = 2, 8, 160, 3
    x_big = jax.random.normal(k2, (n2, c2, t2), dtype=jnp.float32)
    y_big = jax.block_until_ready(chomp1d(x_big, chomp2))
    ref_big = x_big[:, :, :-chomp2]
    assert y_big.shape == (n2, c2, t2 - chomp2)
    assert y_big.dtype == x_big.dtype
    assert jnp.array_equal(y_big, ref_big)

    # bf16 input: exercises the dtype-aware (byte-budget) tile selection.
    n3, c3, t3, chomp3 = 2, 16, 384, 4
    x_bf16 = jax.random.normal(k3, (n3, c3, t3), dtype=jnp.bfloat16)
    y_bf16 = jax.block_until_ready(chomp1d(x_bf16, chomp3))
    ref_bf16 = x_bf16[:, :, :-chomp3]
    assert y_bf16.shape == (n3, c3, t3 - chomp3)
    assert y_bf16.dtype == x_bf16.dtype
    assert jnp.array_equal(y_bf16, ref_bf16)

    print("KERNEL_OK")
</pallas_src>

<mosaic_0001>
module attributes {stable_mosaic.version = 11 : i64} {
  func.func @_slab_chomp_kernel(%arg0: i32, %arg1: memref<8x16xf32, #tpu.memory_space<vmem>>, %arg2: memref<8x13xf32, #tpu.memory_space<vmem>>) attributes {dimension_semantics = [#tpu.dimension_semantics<parallel>], iteration_bounds = array<i64: 1>, scalar_prefetch = 0 : i64, scratch_operands = 0 : i64, tpu.core_type = #tpu.core_type<tc>, window_params = [{transform_indices = @transform_0, window_bounds = array<i64: 8, 16>}, {transform_indices = @transform_1, window_bounds = array<i64: 8, 13>}]} {
    %c0 = arith.constant 0 : index
    %c0_0 = arith.constant 0 : index
    %0 = vector.load %arg1[%c0, %c0_0] : memref<8x16xf32, #tpu.memory_space<vmem>>, vector<8x13xf32>
    %c0_1 = arith.constant 0 : index
    %c0_2 = arith.constant 0 : index
    %1 = vector.load %arg2[%c0_1, %c0_2] : memref<8x13xf32, #tpu.memory_space<vmem>>, vector<8x13xf32>
    tpu.vector_store %arg2[%c0_1, %c0_2], %0 {strides = array<i32>} : memref<8x13xf32, #tpu.memory_space<vmem>>, vector<8x13xf32>,
    return
  }
  func.func @transform_0(%arg0: i32) -> (i32, i32) {
    %c0_i32 = arith.constant 0 : i32
    %c0_i32_0 = arith.constant 0 : i32
    return %arg0, %c0_i32 : i32, i32
  }
  func.func @transform_1(%arg0: i32) -> (i32, i32) {
    %c0_i32 = arith.constant 0 : i32
    %c0_i32_0 = arith.constant 0 : i32
    return %arg0, %c0_i32 : i32, i32
  }
}

</mosaic_0001>

<bundles_post_ra>
// kernel: tpu_custom_call.1
= control target key start
LH: loop header
LB: loop body
LE: loop exit
PB: predicated region body
PF: predicated region fallthrough
CT: control target
= control target key end

     0   :  { %6 = vsyncpa [#allocation3], 0  ;;  %s125_s0 = inlined_call_operand.hbm [shape: f32[8,16], index: 0, kind: input, shape index: {}]   ;;  %s126_s1 = inlined_call_operand.hbm [shape: f32[8,13], index: 1, kind: output, shape index: {}]  }
   0x1   :  { %7 = vsyncpa [#allocation4], 0  ;;  %s89_s6 = smov [#allocation2]   ;;  %s41_s10 = scalar_lea.hbm %s125_s0, 128 }
   0x2   :  { %s14_s7 = sshll.u32 %s89_s6, 4  ;;  %p42_p0 = scmp.ne.s32.totalorder %s125_s0, %s41_s10  ;;  %s15_s7 = int_to_ptr.vmem [resolvable:$true] %s14_s7 }
   0x3   :  { %p45_p1 = scmp.lt.u32.totalorder %s41_s10, %s125_s0 }
   0x5   :  { %p47_p2 = pnand %p45_p1, %p42_p0 }
   0x7   :  { %50 = shalt.err (!%p47_p2)
}
   0x8   :  { %s51_s15 = scalar_lea.vmem %s15_s7, 128  ;;  %p56_p4 = scmp.lt.s32.totalorder %s15_s7, %s15_s7 }
   0x9   :  { %p52_p3 = scmp.ne.s32.totalorder %s15_s7, %s51_s15  ;;  %p57_p5 = scmp.lt.s32.totalorder %s51_s15, %s51_s15 }
   0xb   :  { %p58_p6 = por %p57_p5, %p56_p4 }
   0xd   :  { %p59_p7 = pnand %p58_p6, %p52_p3 }
   0xf   :  { %62 = shalt.err (!%p59_p7)
}
  0x10   :  { %17 = dma.hbm_to_vmem [thread:$0]  %s125_s0, 128, %s15_s7, [#allocation3]  }
  0x11   :  { %85 = dma.done.wait [#allocation3], 128  }
  0x12   :  { %86 = vsyncadd [#allocation3], 4294967168  ;;  %s90_s18 = smov [#allocation5]   ;;  %vm22_vm0 = vcmask 105472   ;;  %v21_v0 = vld [vmem:[#allocation2] sm:$0xff] }
  0x13   :  { %s30_s19 = sshll.u32 %s90_s18, 4  ;;  %23 = vst.msk [vmem:[#allocation5] sm:$0xff] %vm22_vm0, %v21_v0  ;;  %s31_s19 = int_to_ptr.vmem [resolvable:$true] %s30_s19 }
  0x14   :  { %s63_s20 = scalar_lea.vmem %s31_s19, 128  ;;  %p68_p9 = scmp.lt.s32.totalorder %s31_s19, %s31_s19 }
  0x15   :  { %p64_p8 = scmp.ne.s32.totalorder %s31_s19, %s63_s20  ;;  %p69_p10 = scmp.lt.s32.totalorder %s63_s20, %s63_s20 }
  0x17   :  { %p70_p11 = por %p69_p10, %p68_p9 }
  0x19   :  { %p71_p12 = pnand %p70_p11, %p64_p8 }
  0x1b   :  { %74 = shalt.err (!%p71_p12)
}
  0x1c   :  { %s75_s23 = scalar_lea.hbm %s126_s1, 128 }
  0x1d   :  { %p76_p13 = scmp.ne.s32.totalorder %s126_s1, %s75_s23  ;;  %p79_p0 = scmp.lt.u32.totalorder %s75_s23, %s126_s1 }
  0x1f   :  { %p81_p1 = pnand %p79_p0, %p76_p13 }
  0x21   :  { %84 = shalt.err (!%p81_p1)
}
  0x22   :  { %33 = dma.vmem_to_hbm [thread:$0]  %s31_s19, 128, %s126_s1, [#allocation4]  }
  0x23   :  { %87 = dma.done.wait [#allocation4], 128  }
  0x24   :  { %88 = vsyncadd [#allocation4], 4294967168 }
  0x25   :  { %37 = vsyncpa [#allocation3], 1 }
  0x26   :  { %38 = vsyncpa [#allocation4], 1 }

</bundles_post_ra>
